<compile_context>
chip_gen: v7x
topology: tpu7x:2x2x1
jax: 0.10.0
libtpu: 0.0.40
codegen_flags: <defaults>
</compile_context>

<pallas_src>
import jax
import jax.numpy as jnp
from jax import lax
from jax.experimental import pallas as pl
from jax.experimental.pallas import tpu as pltpu

KERNEL_SIZE = 3
PAD = 1


def _round_up(a, b):
    return -(-a // b) * b


def _make_kernel(C, tc, R, HW, W, OFF, masked):
    """Build the kernel body for static (C, tc, chunk R, HW, W, pad OFF)."""
    n_chunks = tc // R

    def kernel(w_ref, mask_ref, x_ref, o_ref, sum_sc, max_sc):
        # w_ref   : (18,) f32 SMEM  -- conv weight (1,2,3,3) OIHW-flattened;
        #                              the avg-channel taps are pre-scaled 1/C.
        # mask_ref: (2, HW) f32 VMEM-- row 0: 1.0 where w > 0,
        #                              row 1: 1.0 where w < W-1.
        # x_ref   : (1, tc, HW)     -- tc flattened channel planes of batch n.
        # o_ref   : (1, 1, HW)
        # sum_sc / max_sc : (1, OFF + HW + OFF) f32 flat scratch; data lives at
        #                   lanes [OFF, OFF+HW), zero padding on both sides
        #                   provides the conv's h-direction zero padding.
        k = pl.program_id(1)

        if masked:
            valid = jnp.minimum(tc, C - k * tc)
            row_ids = lax.broadcasted_iota(jnp.int32, (R, 1), 0)

        # ---- streaming phase: vreg-carried channel sum / max -------------
        def body(i, carry):
            s, m = carry
            start = pl.multiple_of(i * R, R)
            chunk = x_ref[0, pl.ds(start, R), :].astype(jnp.float32)  # (R, HW)
            if masked:
                keep = (row_ids + i * R) < valid
                cs = jnp.where(keep, chunk, 0.0)
                cm = jnp.where(keep, chunk, -jnp.inf)
            else:
                cs = chunk
                cm = chunk
            return s + cs, jnp.maximum(m, cm)

        s0 = jnp.zeros((R, HW), jnp.float32)
        m0 = jnp.full((R, HW), -jnp.inf, jnp.float32)
        s, m = lax.fori_loop(0, n_chunks, body, (s0, m0),
                             unroll=(n_chunks <= 4))
        psum = jnp.sum(s, axis=0, keepdims=True)     # (1, HW)
        pmax = jnp.max(m, axis=0, keepdims=True)     # (1, HW)

        # ---- merge block partials into the resident flat accumulators ----
        @pl.when(k == 0)
        def _first():
            sum_sc[...] = jnp.zeros_like(sum_sc)     # zeroes both pad strips
            max_sc[...] = jnp.zeros_like(max_sc)
            sum_sc[:, pl.ds(OFF, HW)] = psum
            max_sc[:, pl.ds(OFF, HW)] = pmax

        @pl.when(k > 0)
        def _merge():
            sum_sc[:, pl.ds(OFF, HW)] = sum_sc[:, pl.ds(OFF, HW)] + psum
            max_sc[:, pl.ds(OFF, HW)] = jnp.maximum(
                max_sc[:, pl.ds(OFF, HW)], pmax)

        # ---- finalize (once per batch element): 3x3 conv + sigmoid -------
        @pl.when(k == pl.num_programs(1) - 1)
        def _finalize():
            m_left = mask_ref[pl.ds(0, 1), :]        # valid where w > 0
            m_right = mask_ref[pl.ds(1, 1), :]       # valid where w < W-1
            acc = jnp.zeros((1, HW), jnp.float32)
            for kh in range(KERNEL_SIZE):
                for kw in range(KERNEL_SIZE):
                    start = OFF + (kh - 1) * W + (kw - 1)
                    a = (w_ref[0 * 9 + kh * 3 + kw]
                         * sum_sc[:, pl.ds(start, HW)]
                         + w_ref[1 * 9 + kh * 3 + kw]
                         * max_sc[:, pl.ds(start, HW)])
                    if kw == 0:
                        a = a * m_left
                    elif kw == 2:
                        a = a * m_right
                    acc = acc + a
            o_ref[0] = jax.nn.sigmoid(acc).astype(o_ref.dtype)

    return kernel


def _gen_vmem_params():
    """(single-buffer input budget, vmem_limit cap), generation aware."""
    cap = None
    try:
        info = pltpu.get_tpu_info()
        cap = getattr(info, "vmem_capacity_bytes", None)
    except Exception:
        cap = None
    if cap is None:
        cap = 128 << 20
    if cap <= (96 << 20):           # v7x-class: 64 MiB VMEM per TensorCore
        return 8 << 20, 44 << 20
    return 14 << 20, 64 << 20       # v5e / v6e: 128 MiB physical VMEM


def spatial_attention(x, weight, *, in_buffer_budget_bytes=None):
    """x: (N, C, H, W) (f32 or bf16), weight: (1, 2, 3, 3) -> (N, 1, H, W)."""
    N, C, H, W = x.shape
    HW = H * W
    out_dtype = x.dtype
    in_item = jnp.dtype(x.dtype).itemsize
    out_item = jnp.dtype(out_dtype).itemsize

    default_budget, vmem_cap = _gen_vmem_params()
    budget = in_buffer_budget_bytes or default_budget

    sub = 8 * max(1, 4 // in_item)          # sublane group of the stream dtype
    HWp = _round_up(HW, 128)

    # Channel block: largest sublane-group multiple fitting the budget
    # (full C, rounded up to the group, if it fits).  Grid is cdiv(C, tc) and
    # any channel tail is masked in-kernel.
    c_pad = _round_up(C, sub)
    if c_pad * HWp * in_item <= budget:
        tc = c_pad
    else:
        tc = max(sub, (budget // (HWp * in_item)) // sub * sub)
        tc = min(tc, c_pad)
    K = pl.cdiv(C, tc)
    masked = (K * tc != C)

    OFF = W + 1                              # flat zero-pad on each side
    padlen = HW + 2 * OFF

    # Conv weight, OIHW-flattened; fold the 1/C mean scale into the avg taps.
    w_flat = weight.astype(jnp.float32).reshape(-1)
    w_flat = jnp.concatenate([w_flat[:9] / jnp.float32(C), w_flat[9:]])

    # w-boundary masks for the +/-1 horizontal taps (hoisted out of the kernel).
    col = jnp.arange(HW, dtype=jnp.int32) % W
    masks = jnp.stack([(col != 0), (col != W - 1)], axis=0).astype(jnp.float32)

    x_flat = x.reshape(N, C, HW)             # free: contiguous in NCHW

    kernel = _make_kernel(C, tc, sub, HW, W, OFF, masked)

    padlen_p = _round_up(padlen, 128)
    needed = (2 * tc * HWp * in_item         # x blocks (double buffered)
              + 2 * 8 * HWp * 4              # mask input
              + 2 * 8 * HWp * out_item       # output blocks
              + 2 * 8 * padlen_p * 4)        # sum/max scratch
    vmem_limit = int(min(max(2 * needed, 32 << 20), vmem_cap))

    cost = pl.CostEstimate(
        flops=int(N * HW * (2 * C + 4 * 9)),
        transcendentals=int(N * HW),
        bytes_accessed=int(N * C * HW * in_item + N * HW * out_item
                           + 2 * HW * 4 + 18 * 4),
    )

    out_flat = pl.pallas_call(
        kernel,
        out_shape=jax.ShapeDtypeStruct((N, 1, HW), out_dtype),
        grid_spec=pltpu.PrefetchScalarGridSpec(
            num_scalar_prefetch=0,
            grid=(N, K),
            in_specs=[
                pl.BlockSpec(memory_space=pltpu.MemorySpace.SMEM),   # weights
                pl.BlockSpec((2, HW), lambda n, k: (0, 0)),          # masks
                pl.BlockSpec((1, tc, HW), lambda n, k: (n, k, 0)),   # x stream
            ],
            out_specs=pl.BlockSpec((1, 1, HW), lambda n, k: (n, 0, 0)),
            scratch_shapes=[
                pltpu.VMEM((1, padlen), jnp.float32),   # running channel sum
                pltpu.VMEM((1, padlen), jnp.float32),   # running channel max
            ],
        ),
        compiler_params=pltpu.CompilerParams(
            dimension_semantics=("parallel", "arbitrary"),
            vmem_limit_bytes=vmem_limit,
        ),
        cost_estimate=cost,
    )(w_flat, masks, x_flat)

    return out_flat.reshape(N, 1, H, W)


def _reference(x, weight):
    avg = jnp.mean(x, axis=1, keepdims=True)
    mx = jnp.max(x, axis=1, keepdims=True)
    cat = jnp.concatenate([avg, mx], axis=1)
    conv = lax.conv_general_dilated(
        cat, weight, window_strides=(1, 1), padding=((PAD, PAD), (PAD, PAD)),
        dimension_numbers=("NCHW", "OIHW", "NCHW"))
    return jax.nn.sigmoid(conv)


if __name__ == "__main__":
    key = jax.random.PRNGKey(0)
    kx, kw, kx2 = jax.random.split(key, 3)

    # Deterministic conv weight matching nn.Conv2d(2, 1, 3, bias=False)
    # default kaiming-uniform bound = 1/sqrt(fan_in) = 1/sqrt(2*3*3).
    fan_in = 2 * KERNEL_SIZE * KERNEL_SIZE
    bound = 1.0 / float(fan_in) ** 0.5
    weight = jax.random.uniform(
        kw, (1, 2, KERNEL_SIZE, KERNEL_SIZE), dtype=jnp.float32,
        minval=-bound, maxval=bound)

    # Case 1: nominal small shape.
    N, C, H, W = 2, 4, 16, 16
    x = jax.random.normal(kx, (N, C, H, W), dtype=jnp.float32)
    out = jax.block_until_ready(spatial_attention(x, weight))
    ref = _reference(x, weight)
    assert out.shape == (N, 1, H, W)
    assert jnp.allclose(out, ref, atol=1e-5, rtol=1e-5), "f32 mismatch"

    # Case 2: awkward channel count (tail mask), non-128-multiple H*W, and a
    # multi-step channel grid forced by a tiny input-buffer budget.
    N2, C2, H2, W2 = 2, 11, 13, 24
    x2 = jax.random.normal(kx2, (N2, C2, H2, W2), dtype=jnp.float32)
    out2 = jax.block_until_ready(
        spatial_attention(x2, weight, in_buffer_budget_bytes=13_000))
    ref2 = _reference(x2, weight)
    assert out2.shape == (N2, 1, H2, W2)
    assert jnp.allclose(out2, ref2, atol=1e-5, rtol=1e-5), "tail-case mismatch"

    # Case 3: x already bf16 in HBM (no wrapper-side cast; f32 accumulation).
    x_bf = x.astype(jnp.bfloat16)
    out_bf = jax.block_until_ready(spatial_attention(x_bf, weight))
    ref_bf = _reference(x_bf.astype(jnp.float32), weight)
    assert jnp.allclose(out_bf.astype(jnp.float32), ref_bf,
                        atol=3e-2, rtol=3e-2), "bf16 path mismatch"

    print("KERNEL_OK")
</pallas_src>

<mosaic_0001>
module attributes {stable_mosaic.version = 11 : i64} {
  func.func @kernel(%arg0: i32, %arg1: i32, %arg2: memref<18xf32, #tpu.memory_space<smem>>, %arg3: memref<2x256xf32, #tpu.memory_space<vmem>>, %arg4: memref<1x8x256xf32, #tpu.memory_space<vmem>>, %arg5: memref<1x1x256xf32, #tpu.memory_space<vmem>>, %arg6: memref<1x290xf32, #tpu.memory_space<vmem>>, %arg7: memref<1x290xf32, #tpu.memory_space<vmem>>) attributes {dimension_semantics = [#tpu.dimension_semantics<parallel>, #tpu.dimension_semantics<arbitrary>], iteration_bounds = array<i64: 2, 1>, scalar_prefetch = 0 : i64, scratch_operands = 2 : i64, tpu.core_type = #tpu.core_type<tc>, window_params = [{transform_indices = @transform_0, window_bounds = array<i64: 18>}, {pipeline_mode = #tpu.pipeline_mode<synchronous>, transform_indices = @transform_1, window_bounds = array<i64: 2, 256>}, {transform_indices = @transform_2, window_bounds = array<i64: 1, 8, 256>}, {transform_indices = @transform_3, window_bounds = array<i64: 1, 1, 256>}]} {
    %c8_i32 = arith.constant 8 : i32
    %0 = arith.muli %arg1, %c8_i32 : i32
    %c4_i32 = arith.constant 4 : i32
    %1 = arith.subi %c4_i32, %0 : i32
    %c8_i32_0 = arith.constant 8 : i32
    %2 = arith.minsi %c8_i32_0, %1 : i32
    %3 = tpu.iota {dimensions = array<i32: 0>} : vector<8x1xi32>
    %cst = arith.constant 0.000000e+00 : f32
    %4 = vector.broadcast %cst : f32 to vector<8x256xf32>
    %cst_1 = arith.constant 0xFF800000 : f32
    %5 = vector.broadcast %cst_1 : f32 to vector<8x256xf32>
    %c0_i32 = arith.constant 0 : i32
    %c8_i32_2 = arith.constant 8 : i32
    %6 = arith.muli %c0_i32, %c8_i32_2 : i32
    %7 = tpu.assume_multiple %6, 8 : i32
    %c0 = arith.constant 0 : index
    %8 = arith.index_cast %7 : i32 to index
    %c0_3 = arith.constant 0 : index
    %9 = vector.load %arg4[%c0, %8, %c0_3] : memref<1x8x256xf32, #tpu.memory_space<vmem>>, vector<1x8x256xf32>
    %10 = vector.shape_cast %9 : vector<1x8x256xf32> to vector<8x256xf32>
    %c8_i32_4 = arith.constant 8 : i32
    %11 = arith.muli %c0_i32, %c8_i32_4 : i32
    %12 = vector.broadcast %11 : i32 to vector<8x1xi32>
    %13 = arith.addi %3, %12 : vector<8x1xi32>
    %14 = vector.broadcast %2 : i32 to vector<8x1xi32>
    %15 = arith.cmpi slt, %13, %14 : vector<8x1xi32>
    %cst_5 = arith.constant 0.000000e+00 : f32
    %16 = vector.shape_cast %15 : vector<8x1xi1> to vector<8x1xi1>
    %17 = vector.broadcast %16 : vector<8x1xi1> to vector<8x256xi1>
    %18 = vector.broadcast %cst_5 : f32 to vector<8x256xf32>
    %19 = arith.select %17, %10, %18 : vector<8x256xi1>, vector<8x256xf32>
    %cst_6 = arith.constant 0xFF800000 : f32
    %20 = vector.shape_cast %15 : vector<8x1xi1> to vector<8x1xi1>
    %21 = vector.broadcast %20 : vector<8x1xi1> to vector<8x256xi1>
    %22 = vector.broadcast %cst_6 : f32 to vector<8x256xf32>
    %23 = arith.select %21, %10, %22 : vector<8x256xi1>, vector<8x256xf32>
    %24 = arith.addf %4, %19 : vector<8x256xf32>
    %25 = arith.maximumf %5, %23 : vector<8x256xf32>
    %c1_i32 = arith.constant 1 : i32
    %cst_7 = arith.constant dense<0.000000e+00> : vector<256xf32>
    %26 = vector.multi_reduction <add>, %24, %cst_7 [0] : vector<8x256xf32> to vector<256xf32>
    %27 = vector.shape_cast %26 : vector<256xf32> to vector<1x256xf32>
    %cst_8 = arith.constant dense<0xFF800000> : vector<256xf32>
    %28 = vector.multi_reduction <maximumf>, %25, %cst_8 [0] : vector<8x256xf32> to vector<256xf32>
    %29 = vector.shape_cast %28 : vector<256xf32> to vector<1x256xf32>
    %c0_i32_9 = arith.constant 0 : i32
    %30 = arith.cmpi eq, %arg1, %c0_i32_9 : i32
    %31 = arith.extui %30 : i1 to i32
    %c0_i32_10 = arith.constant 0 : i32
    %32 = arith.cmpi ne, %31, %c0_i32_10 : i32
    scf.if %32 {
      %cst_15 = arith.constant 0.000000e+00 : f32
      %39 = vector.broadcast %cst_15 : f32 to vector<1x290xf32>
      %c0_16 = arith.constant 0 : index
      %c0_17 = arith.constant 0 : index
      %40 = vector.load %arg6[%c0_16, %c0_17] : memref<1x290xf32, #tpu.memory_space<vmem>>, vector<1x290xf32>
      tpu.vector_store %arg6[%c0_16, %c0_17], %39 {strides = array<i32>} : memref<1x290xf32, #tpu.memory_space<vmem>>, vector<1x290xf32>,
      %cst_18 = arith.constant 0.000000e+00 : f32
      %41 = vector.broadcast %cst_18 : f32 to vector<1x290xf32>
      %c0_19 = arith.constant 0 : index
      %c0_20 = arith.constant 0 : index
      %42 = vector.load %arg7[%c0_19, %c0_20] : memref<1x290xf32, #tpu.memory_space<vmem>>, vector<1x290xf32>
      tpu.vector_store %arg7[%c0_19, %c0_20], %41 {strides = array<i32>} : memref<1x290xf32, #tpu.memory_space<vmem>>, vector<1x290xf32>,
      %c0_21 = arith.constant 0 : index
      %c17 = arith.constant 17 : index
      %43 = vector.load %arg6[%c0_21, %c17] : memref<1x290xf32, #tpu.memory_space<vmem>>, vector<1x256xf32>
      tpu.vector_store %arg6[%c0_21, %c17], %27 {strides = array<i32>} : memref<1x290xf32, #tpu.memory_space<vmem>>, vector<1x256xf32>,
      %c0_22 = arith.constant 0 : index
      %c17_23 = arith.constant 17 : index
      %44 = vector.load %arg7[%c0_22, %c17_23] : memref<1x290xf32, #tpu.memory_space<vmem>>, vector<1x256xf32>
      tpu.vector_store %arg7[%c0_22, %c17_23], %29 {strides = array<i32>} : memref<1x290xf32, #tpu.memory_space<vmem>>, vector<1x256xf32>,
    } else {
    }
    %c0_i32_11 = arith.constant 0 : i32
    %33 = arith.cmpi sgt, %arg1, %c0_i32_11 : i32
    %34 = arith.extui %33 : i1 to i32
    %c0_i32_12 = arith.constant 0 : i32
    %35 = arith.cmpi ne, %34, %c0_i32_12 : i32
    scf.if %35 {
      %c0_15 = arith.constant 0 : index
      %c17 = arith.constant 17 : index
      %39 = vector.load %arg6[%c0_15, %c17] : memref<1x290xf32, #tpu.memory_space<vmem>>, vector<1x256xf32>
      %40 = arith.addf %39, %27 : vector<1x256xf32>
      %c0_16 = arith.constant 0 : index
      %c17_17 = arith.constant 17 : index
      %41 = vector.load %arg6[%c0_16, %c17_17] : memref<1x290xf32, #tpu.memory_space<vmem>>, vector<1x256xf32>
      tpu.vector_store %arg6[%c0_16, %c17_17], %40 {strides = array<i32>} : memref<1x290xf32, #tpu.memory_space<vmem>>, vector<1x256xf32>,
      %c0_18 = arith.constant 0 : index
      %c17_19 = arith.constant 17 : index
      %42 = vector.load %arg7[%c0_18, %c17_19] : memref<1x290xf32, #tpu.memory_space<vmem>>, vector<1x256xf32>
      %43 = arith.maximumf %42, %29 : vector<1x256xf32>
      %c0_20 = arith.constant 0 : index
      %c17_21 = arith.constant 17 : index
      %44 = vector.load %arg7[%c0_20, %c17_21] : memref<1x290xf32, #tpu.memory_space<vmem>>, vector<1x256xf32>
      tpu.vector_store %arg7[%c0_20, %c17_21], %43 {strides = array<i32>} : memref<1x290xf32, #tpu.memory_space<vmem>>, vector<1x256xf32>,
    } else {
    }
    %c0_i32_13 = arith.constant 0 : i32
    %36 = arith.cmpi eq, %arg1, %c0_i32_13 : i32
    %37 = arith.extui %36 : i1 to i32
    %c0_i32_14 = arith.constant 0 : i32
    %38 = arith.cmpi ne, %37, %c0_i32_14 : i32
    scf.if %38 {
      %c0_15 = arith.constant 0 : index
      %c0_16 = arith.constant 0 : index
      %39 = vector.load %arg3[%c0_15, %c0_16] : memref<2x256xf32, #tpu.memory_space<vmem>>, vector<1x256xf32>
      %c1 = arith.constant 1 : index
      %c0_17 = arith.constant 0 : index
      %40 = vector.load %arg3[%c1, %c0_17] : memref<2x256xf32, #tpu.memory_space<vmem>>, vector<1x256xf32>
      %cst_18 = arith.constant 0.000000e+00 : f32
      %41 = vector.broadcast %cst_18 : f32 to vector<1x256xf32>
      %c0_19 = arith.constant 0 : index
      %42 = memref.load %arg2[%c0_19] : memref<18xf32, #tpu.memory_space<smem>>
      %c0_20 = arith.constant 0 : index
      %c0_21 = arith.constant 0 : index
      %43 = vector.load %arg6[%c0_20, %c0_21] : memref<1x290xf32, #tpu.memory_space<vmem>>, vector<1x256xf32>
      %44 = vector.broadcast %42 : f32 to vector<1x256xf32>
      %45 = arith.mulf %44, %43 : vector<1x256xf32>
      %c9 = arith.constant 9 : index
      %46 = memref.load %arg2[%c9] : memref<18xf32, #tpu.memory_space<smem>>
      %c0_22 = arith.constant 0 : index
      %c0_23 = arith.constant 0 : index
      %47 = vector.load %arg7[%c0_22, %c0_23] : memref<1x290xf32, #tpu.memory_space<vmem>>, vector<1x256xf32>
      %48 = vector.broadcast %46 : f32 to vector<1x256xf32>
      %49 = arith.mulf %48, %47 : vector<1x256xf32>
      %50 = arith.addf %45, %49 : vector<1x256xf32>
      %51 = arith.mulf %50, %39 : vector<1x256xf32>
      %52 = arith.addf %41, %51 : vector<1x256xf32>
      %c1_24 = arith.constant 1 : index
      %53 = memref.load %arg2[%c1_24] : memref<18xf32, #tpu.memory_space<smem>>
      %c0_25 = arith.constant 0 : index
      %c1_26 = arith.constant 1 : index
      %54 = vector.load %arg6[%c0_25, %c1_26] : memref<1x290xf32, #tpu.memory_space<vmem>>, vector<1x256xf32>
      %55 = vector.broadcast %53 : f32 to vector<1x256xf32>
      %56 = arith.mulf %55, %54 : vector<1x256xf32>
      %c10 = arith.constant 10 : index
      %57 = memref.load %arg2[%c10] : memref<18xf32, #tpu.memory_space<smem>>
      %c0_27 = arith.constant 0 : index
      %c1_28 = arith.constant 1 : index
      %58 = vector.load %arg7[%c0_27, %c1_28] : memref<1x290xf32, #tpu.memory_space<vmem>>, vector<1x256xf32>
      %59 = vector.broadcast %57 : f32 to vector<1x256xf32>
      %60 = arith.mulf %59, %58 : vector<1x256xf32>
      %61 = arith.addf %56, %60 : vector<1x256xf32>
      %62 = arith.addf %52, %61 : vector<1x256xf32>
      %c2 = arith.constant 2 : index
      %63 = memref.load %arg2[%c2] : memref<18xf32, #tpu.memory_space<smem>>
      %c0_29 = arith.constant 0 : index
      %c2_30 = arith.constant 2 : index
      %64 = vector.load %arg6[%c0_29, %c2_30] : memref<1x290xf32, #tpu.memory_space<vmem>>, vector<1x256xf32>
      %65 = vector.broadcast %63 : f32 to vector<1x256xf32>
      %66 = arith.mulf %65, %64 : vector<1x256xf32>
      %c11 = arith.constant 11 : index
      %67 = memref.load %arg2[%c11] : memref<18xf32, #tpu.memory_space<smem>>
      %c0_31 = arith.constant 0 : index
      %c2_32 = arith.constant 2 : index
      %68 = vector.load %arg7[%c0_31, %c2_32] : memref<1x290xf32, #tpu.memory_space<vmem>>, vector<1x256xf32>
      %69 = vector.broadcast %67 : f32 to vector<1x256xf32>
      %70 = arith.mulf %69, %68 : vector<1x256xf32>
      %71 = arith.addf %66, %70 : vector<1x256xf32>
      %72 = arith.mulf %71, %40 : vector<1x256xf32>
      %73 = arith.addf %62, %72 : vector<1x256xf32>
      %c3 = arith.constant 3 : index
      %74 = memref.load %arg2[%c3] : memref<18xf32, #tpu.memory_space<smem>>
      %c0_33 = arith.constant 0 : index
      %c16 = arith.constant 16 : index
      %75 = vector.load %arg6[%c0_33, %c16] : memref<1x290xf32, #tpu.memory_space<vmem>>, vector<1x256xf32>
      %76 = vector.broadcast %74 : f32 to vector<1x256xf32>
      %77 = arith.mulf %76, %75 : vector<1x256xf32>
      %c12 = arith.constant 12 : index
      %78 = memref.load %arg2[%c12] : memref<18xf32, #tpu.memory_space<smem>>
      %c0_34 = arith.constant 0 : index
      %c16_35 = arith.constant 16 : index
      %79 = vector.load %arg7[%c0_34, %c16_35] : memref<1x290xf32, #tpu.memory_space<vmem>>, vector<1x256xf32>
      %80 = vector.broadcast %78 : f32 to vector<1x256xf32>
      %81 = arith.mulf %80, %79 : vector<1x256xf32>
      %82 = arith.addf %77, %81 : vector<1x256xf32>
      %83 = arith.mulf %82, %39 : vector<1x256xf32>
      %84 = arith.addf %73, %83 : vector<1x256xf32>
      %c4 = arith.constant 4 : index
      %85 = memref.load %arg2[%c4] : memref<18xf32, #tpu.memory_space<smem>>
      %c0_36 = arith.constant 0 : index
      %c17 = arith.constant 17 : index
      %86 = vector.load %arg6[%c0_36, %c17] : memref<1x290xf32, #tpu.memory_space<vmem>>, vector<1x256xf32>
      %87 = vector.broadcast %85 : f32 to vector<1x256xf32>
      %88 = arith.mulf %87, %86 : vector<1x256xf32>
      %c13 = arith.constant 13 : index
      %89 = memref.load %arg2[%c13] : memref<18xf32, #tpu.memory_space<smem>>
      %c0_37 = arith.constant 0 : index
      %c17_38 = arith.constant 17 : index
      %90 = vector.load %arg7[%c0_37, %c17_38] : memref<1x290xf32, #tpu.memory_space<vmem>>, vector<1x256xf32>
      %91 = vector.broadcast %89 : f32 to vector<1x256xf32>
      %92 = arith.mulf %91, %90 : vector<1x256xf32>
      %93 = arith.addf %88, %92 : vector<1x256xf32>
      %94 = arith.addf %84, %93 : vector<1x256xf32>
      %c5 = arith.constant 5 : index
      %95 = memref.load %arg2[%c5] : memref<18xf32, #tpu.memory_space<smem>>
      %c0_39 = arith.constant 0 : index
      %c18 = arith.constant 18 : index
      %96 = vector.load %arg6[%c0_39, %c18] : memref<1x290xf32, #tpu.memory_space<vmem>>, vector<1x256xf32>
      %97 = vector.broadcast %95 : f32 to vector<1x256xf32>
      %98 = arith.mulf %97, %96 : vector<1x256xf32>
      %c14 = arith.constant 14 : index
      %99 = memref.load %arg2[%c14] : memref<18xf32, #tpu.memory_space<smem>>
      %c0_40 = arith.constant 0 : index
      %c18_41 = arith.constant 18 : index
      %100 = vector.load %arg7[%c0_40, %c18_41] : memref<1x290xf32, #tpu.memory_space<vmem>>, vector<1x256xf32>
      %101 = vector.broadcast %99 : f32 to vector<1x256xf32>
      %102 = arith.mulf %101, %100 : vector<1x256xf32>
      %103 = arith.addf %98, %102 : vector<1x256xf32>
      %104 = arith.mulf %103, %40 : vector<1x256xf32>
      %105 = arith.addf %94, %104 : vector<1x256xf32>
      %c6 = arith.constant 6 : index
      %106 = memref.load %arg2[%c6] : memref<18xf32, #tpu.memory_space<smem>>
      %c0_42 = arith.constant 0 : index
      %c32 = arith.constant 32 : index
      %107 = vector.load %arg6[%c0_42, %c32] : memref<1x290xf32, #tpu.memory_space<vmem>>, vector<1x256xf32>
      %108 = vector.broadcast %106 : f32 to vector<1x256xf32>
      %109 = arith.mulf %108, %107 : vector<1x256xf32>
      %c15 = arith.constant 15 : index
      %110 = memref.load %arg2[%c15] : memref<18xf32, #tpu.memory_space<smem>>
      %c0_43 = arith.constant 0 : index
      %c32_44 = arith.constant 32 : index
      %111 = vector.load %arg7[%c0_43, %c32_44] : memref<1x290xf32, #tpu.memory_space<vmem>>, vector<1x256xf32>
      %112 = vector.broadcast %110 : f32 to vector<1x256xf32>
      %113 = arith.mulf %112, %111 : vector<1x256xf32>
      %114 = arith.addf %109, %113 : vector<1x256xf32>
      %115 = arith.mulf %114, %39 : vector<1x256xf32>
      %116 = arith.addf %105, %115 : vector<1x256xf32>
      %c7 = arith.constant 7 : index
      %117 = memref.load %arg2[%c7] : memref<18xf32, #tpu.memory_space<smem>>
      %c0_45 = arith.constant 0 : index
      %c33 = arith.constant 33 : index
      %118 = vector.load %arg6[%c0_45, %c33] : memref<1x290xf32, #tpu.memory_space<vmem>>, vector<1x256xf32>
      %119 = vector.broadcast %117 : f32 to vector<1x256xf32>
      %120 = arith.mulf %119, %118 : vector<1x256xf32>
      %c16_46 = arith.constant 16 : index
      %121 = memref.load %arg2[%c16_46] : memref<18xf32, #tpu.memory_space<smem>>
      %c0_47 = arith.constant 0 : index
      %c33_48 = arith.constant 33 : index
      %122 = vector.load %arg7[%c0_47, %c33_48] : memref<1x290xf32, #tpu.memory_space<vmem>>, vector<1x256xf32>
      %123 = vector.broadcast %121 : f32 to vector<1x256xf32>
      %124 = arith.mulf %123, %122 : vector<1x256xf32>
      %125 = arith.addf %120, %124 : vector<1x256xf32>
      %126 = arith.addf %116, %125 : vector<1x256xf32>
      %c8 = arith.constant 8 : index
      %127 = memref.load %arg2[%c8] : memref<18xf32, #tpu.memory_space<smem>>
      %c0_49 = arith.constant 0 : index
      %c34 = arith.constant 34 : index
      %128 = vector.load %arg6[%c0_49, %c34] : memref<1x290xf32, #tpu.memory_space<vmem>>, vector<1x256xf32>
      %129 = vector.broadcast %127 : f32 to vector<1x256xf32>
      %130 = arith.mulf %129, %128 : vector<1x256xf32>
      %c17_50 = arith.constant 17 : index
      %131 = memref.load %arg2[%c17_50] : memref<18xf32, #tpu.memory_space<smem>>
      %c0_51 = arith.constant 0 : index
      %c34_52 = arith.constant 34 : index
      %132 = vector.load %arg7[%c0_51, %c34_52] : memref<1x290xf32, #tpu.memory_space<vmem>>, vector<1x256xf32>
      %133 = vector.broadcast %131 : f32 to vector<1x256xf32>
      %134 = arith.mulf %133, %132 : vector<1x256xf32>
      %135 = arith.addf %130, %134 : vector<1x256xf32>
      %136 = arith.mulf %135, %40 : vector<1x256xf32>
      %137 = arith.addf %126, %136 : vector<1x256xf32>
      %138 = arith.negf %137 : vector<1x256xf32>
      %139 = math.exp %138 : vector<1x256xf32>
      %cst_53 = arith.constant 1.000000e+00 : f32
      %140 = vector.broadcast %cst_53 : f32 to vector<1x256xf32>
      %141 = arith.addf %140, %139 : vector<1x256xf32>
      %142 = arith.divf %140, %141 : vector<1x256xf32>
      %c0_54 = arith.constant 0 : index
      %c0_55 = arith.constant 0 : index
      %c0_56 = arith.constant 0 : index
      %143 = vector.load %arg5[%c0_54, %c0_55, %c0_56] : memref<1x1x256xf32, #tpu.memory_space<vmem>>, vector<1x1x256xf32>
      %144 = vector.shape_cast %143 : vector<1x1x256xf32> to vector<1x256xf32>
      %145 = vector.shape_cast %142 : vector<1x256xf32> to vector<1x1x256xf32>
      tpu.vector_store %arg5[%c0_54, %c0_55, %c0_56], %145 {strides = array<i32>} : memref<1x1x256xf32, #tpu.memory_space<vmem>>, vector<1x1x256xf32>,
    } else {
    }
    return
  }
  func.func @transform_0(%arg0: i32, %arg1: i32) -> i32 {
    %c0_i32 = arith.constant 0 : i32
    %c0_i32_0 = arith.constant 0 : i32
    return %c0_i32 : i32
  }
  func.func @transform_1(%arg0: i32, %arg1: i32) -> (i32, i32) {
    %c0_i32 = arith.constant 0 : i32
    %c0_i32_0 = arith.constant 0 : i32
    %c0_i32_1 = arith.constant 0 : i32
    return %c0_i32, %c0_i32_0 : i32, i32
  }
  func.func @transform_2(%arg0: i32, %arg1: i32) -> (i32, i32, i32) {
    %c0_i32 = arith.constant 0 : i32
    %c0_i32_0 = arith.constant 0 : i32
    return %arg0, %arg1, %c0_i32 : i32, i32, i32
  }
  func.func @transform_3(%arg0: i32, %arg1: i32) -> (i32, i32, i32) {
    %c0_i32 = arith.constant 0 : i32
    %c0_i32_0 = arith.constant 0 : i32
    %c0_i32_1 = arith.constant 0 : i32
    return %arg0, %c0_i32, %c0_i32_0 : i32, i32, i32
  }
}

</mosaic_0001>

<bundles_post_ra>
// kernel: tpu_custom_call.1
= control target key start
LH: loop header
LB: loop body
LE: loop exit
PB: predicated region body
PF: predicated region fallthrough
CT: control target
= control target key end

     0   :  { %8 = vsyncpa [#allocation7], 0  ;;  %s1371_s0 = inlined_call_operand.hbm [shape: f32[18], index: 0, kind: input, shape index: {}]   ;;  %s1372_s1 = inlined_call_operand.hbm [shape: f32[2,256], index: 1, kind: input, shape index: {}]   ;;  %s1373_s2 = inlined_call_operand.hbm [shape: f32[2,4,256], index: 2, kind: input, shape index: {}]   ;;  %s1374_s3 = inlined_call_operand.hbm [shape: f32[2,1,256], index: 3, kind: output, shape index: {}]  }
   0x1   :  { %9 = vsyncpa [#allocation5], 0 }
   0x2   :  { %10 = vsyncpa [#allocation10], 0 }
   0x3   :  { %12 = vsyncpa [#allocation10 + $0x1], 0 }
   0x4   :  { %13 = vsyncpa [#allocation6], 0 }
   0x5   :  { %15 = vsyncpa [#allocation6 + $0x1], 0  ;;  %s1057_s12 = smov 0   ;;  %s1059_s13 = smov 0  }
   0x6   :  { %s1061_s14 = smov 0   ;;  %s1063_s15 = smov 0  }
   0x7   :  { %s1065_s16 = smov 0   ;;  %s1067_s17 = smov 0  }
   0x8 LB: > { %s717_s18 = sadd.s32 4294967295, %s1013_s17   ;;  %s718_s19 = sadd.s32 4294967294, %s1013_s17   ;;  %s1013_s17 = sphi %s1067_s17, %s21_s17   ;;  %s1009_s16 = sphi %s1065_s16, %s1401_s16   ;;  %s1005_s15 = sphi %s1063_s15, %s1400_s15   ;;  %s1001_s14 = sphi %s1061_s14, %s1399_s14   ;;  %s997_s13 = sphi %s1059_s13, %s1398_s13   ;;  %s993_s12 = sphi %s1057_s12, %s1397_s12  }
   0x9   : > { %s33_s20 = sadd.s32 1, %s1009_s16  ;;  %s84_s21 = sadd.s32 1, %s1001_s14 }
   0xa   : > { %p35_p0 = scmp.ge.s32.totalorder %s33_s20, 2  ;;  %p91_p1 = scmp.ne.s32.totalorder %s1001_s14, %s997_s13 }
   0xb   : > { %p92_p2 = scmp.eq.s32.totalorder %s1013_s17, 0  ;;  %p97_p3 = scmp.ne.s32.totalorder %s997_s13, %s993_s12 }
   0xc   : > { %s1403_s20 = smov (%p35_p0, %s33_s20), 0  ;;  %p1102_p5 = scmp.eq.s32.totalorder %s717_s18, 0 }
   0xd   : > { %p1098_p4 = por %p92_p2, %p91_p1  ;;  %s79_s24 = ssub.s32 %s1009_s16, %s1403_s20 }
   0xe   : > { %s1381_s23 = scalar_select %p1102_p5, 1, 0 }
   0xf   : > { %s1380_s22 = scalar_select %p1098_p4, 1, 0 }
  0x10   : > { %p121_p6 = scmp.eq.s32.totalorder %s717_s18, 1  ;;  %p82_p7 = scmp.eq.s32.totalorder %s79_s24, 0 }
  0x11   : > { %p1110_p8 = por %p1102_p5, %p97_p3  ;;  %p127_p10 = scmp.eq.s32.totalorder %s718_s19, 1 }
  0x12   : > { %p1114_p9 = por %p121_p6, %p91_p1  ;;  %p719_p12 = scmp.ge.s32.totalorder %s1013_s17, 1 }
  0x13   : > { %s1382_s25 = scalar_select %p1110_p8, 1, 0 }
  0x14   : > { %s1383_s26 = scalar_select %p1114_p9, 1, 0 }
  0x15   : > { %s1119_s27 = scalar_select %p82_p7, %s1001_s14, %s84_s21  }
  0x16   : > { %p1121_p11 = por %p127_p10, %p97_p3  ;;  %p134_p13 = scmp.lt.s32.totalorder %s1013_s17, 3 }
  0x17   : > { %s1015_s30 = smov [#allocation8]   ;;  %s858_s8 = scalar_lea.hbm %s1371_s0, 16 }
  0x18   : > { %s1384_s28 = scalar_select %p1121_p11, 1, 0 }
  0x19   : > { %p1127_p0 = pnand %p719_p12, %p134_p13  ;;  %s156_s4 = sshll.u32 %s1015_s30, 4  ;;  %s157_s4 = int_to_ptr.vmem [resolvable:$true] %s156_s4 }
  0x1a   : > { %p859_p3 = scmp.ne.s32.totalorder %s1371_s0, %s858_s8  ;;  %p865_p12 = scmp.lt.u32.totalorder %s858_s8, %s1371_s0 }
  0x1b   : > { %s1385_s29 = scalar_select %p1127_p0, 1, 0 }
  0x1c   : > { %p767_p2 = pneg %p1127_p0 }
  0x1e   : > { %p1135_p1 = pnand %p767_p2, %p1102_p5 }
  0x20   : > { %p860_p6 = pneg %p1135_p1 }
  0x22   : > { %p861_p7 = pnand %p860_p6, %p859_p3 }
  0x24   : > { %p862_p10 = pneg %p861_p7 }
  0x26   : > { %p867_p13 = pnand %p865_p12, %p862_p10 }
  0x28   : > { %870 = shalt.err (!%p867_p13)
}
  0x29   : > { %s1016_s19 = smov [#allocation4]   ;;  %s871_s7 = scalar_lea.hbm %s1372_s1, 64 }
  0x2a   : > { %770 = dma.hbm_to_smem (!%p1135_p1), %s1371_s0, 16, %s1016_s19, [#allocation7]  }
  0x2b   : > { %p872_p2 = scmp.ne.s32.totalorder %s1372_s1, %s871_s7  ;;  %p878_p10 = scmp.lt.u32.totalorder %s871_s7, %s1372_s1 }
  0x2d   : > { %p874_p3 = pnand %p872_p2, %p860_p6 }
  0x2f   : > { %p875_p7 = pneg %p874_p3 }
  0x31   : > { %p880_p12 = pnand %p878_p10, %p875_p7 }
  0x33   : > { %883 = shalt.err (!%p880_p12)
}
  0x34   : > { %s884_s18 = scalar_lea.vmem %s157_s4, 64  ;;  %p892_p8 = scmp.lt.s32.totalorder %s157_s4, %s157_s4 }
  0x35   : > { %p885_p13 = scmp.ne.s32.totalorder %s157_s4, %s884_s18  ;;  %p893_p5 = scmp.lt.s32.totalorder %s884_s18, %s884_s18 }
  0x37   : > { %p887_p11 = pnand %p885_p13, %p860_p6  ;;  %p894_p0 = por %p893_p5, %p892_p8 }
  0x39   : > { %p888_p9 = pneg %p887_p11 }
  0x3b   : > { %p895_p4 = pnand %p894_p0, %p888_p9 }
  0x3d   : > { %898 = shalt.err (!%p895_p4)
}
  0x3e   : > { %773 = dma.hbm_to_vmem [thread:$0]  (!%p1135_p1), %s1372_s1, 64, %s157_s4, [#allocation5]  }
  0x3f   : > { %p722_p2 = scmp.ge.s32.totalorder %s1013_s17, 2 }
  0x40   : > { %p1387_p3 = scmp.ne.s32.totalorder (!%p722_p2), %s1380_s22, 0 }
  0x41   : > { %163 = sbr.rel (%p722_p2) target bundleno = 103 (0x67), region = 24 }
  0x48   : > { %166 = sbr.rel (!%p1387_p3) target bundleno = 103 (0x67), region = 28  ;;  %s167_s24 = sand.u32 (%p1387_p3), 1, %s1001_s14  }
  0x49   : > { %s723_s30 = sshll.u32 (%p1387_p3), %s167_s24, 4  ;;  %s1184_s6 = scalar_lea.sflag (%p1387_p3), [#allocation10], %s167_s24 }
  0x4a   : > { %s171_s7 = scalar_lea.vmem (%p1387_p3), [#allocation9], %s723_s30 }
  0x4f   : > { %178 = vsyncadd %s1184_s6, 128  ;;  %s754_s5 = sshll.u32 %s1009_s16, 7  ;;  %s186_s9 = sshll.u32 %s171_s7, 4  ;;  %s187_s9 = int_to_ptr.vmem [resolvable:$true] %s186_s9 }
  0x50   : > { %s1191_s8 = scalar_lea.hbm %s1373_s2, %s754_s5  ;;  %s901_s19 = scalar_lea.hbm %s1373_s2, 256 }
  0x51   : > { %s899_s22 = scalar_lea.hbm %s1191_s8, 128  ;;  %p902_p5 = scmp.lt.u32.totalorder %s1191_s8, %s1373_s2 }
  0x52   : > { %p900_p4 = scmp.ne.s32.totalorder %s1191_s8, %s899_s22  ;;  %p903_p8 = scmp.lt.u32.totalorder %s901_s19, %s899_s22 }
  0x53   : > { %p905_p11 = scmp.lt.u32.totalorder %s899_s22, %s1191_s8 }
  0x54   : > { %p904_p9 = por %p903_p8, %p902_p5 }
  0x56   : > { %p906_p0 = por %p905_p11, %p904_p9 }
  0x58   : > { %p907_p1 = pnand %p906_p0, %p900_p4 }
  0x5a   : > { %910 = shalt.err (!%p907_p1)
}
  0x5b   : > { %s911_s30 = scalar_lea.vmem %s187_s9, 128  ;;  %s1017_s7 = smov [#allocation9]  }
  0x5c   : > { %p912_p6 = scmp.ne.s32.totalorder %s187_s9, %s911_s30  ;;  %s913_s5 = sshll.u32 %s1017_s7, 4  ;;  %s914_s5 = int_to_ptr.vmem [resolvable:$false] %s913_s5 }
  0x5d   : > { %s915_s4 = scalar_lea.vmem %s914_s5, 512  ;;  %p916_p7 = scmp.lt.s32.totalorder %s187_s9, %s914_s5 }
  0x5e   : > { %p917_p10 = scmp.lt.s32.totalorder %s915_s4, %s911_s30 }
  0x60   : > { %p918_p12 = por %p917_p10, %p916_p7 }
  0x62   : > { %p919_p13 = pnand %p918_p12, %p912_p6 }
  0x64   : > { %922 = shalt.err (!%p919_p13)
}
  0x65   : > { %s1018_s10 = smov 128   ;;  %s1019_s11 = smov 8  }
  0x66   : > { %192 = dma.hbm_to_vmem [thread:$0]  %s1191_s8, 128, %s187_s9, %s1184_s6, %s1018_s10, %s1018_s10, %s1019_s11  }
  0x67 PF: > { %p1388_p3 = scmp.ne.s32.totalorder %s1385_s29, 0 }
  0x68   : > { %p1389_p4 = scmp.ne.s32.totalorder (!%p1388_p3), %s1381_s23, 0 }
  0x69   : > { %198 = sbr.rel (%p1388_p3) target bundleno = 453 (0x1c5), region = 32 }
  0x70   : > { %976 = dma.done.wait (%p1389_p4), [#allocation7], 16  }
  0x71   : > { %978 = vsyncadd (%p1389_p4), [#allocation7], 4294967280 }
  0x72   : > { %980 = dma.done.wait (%p1389_p4), [#allocation5], 64  }
  0x73   : > { %982 = vsyncadd (%p1389_p4), [#allocation5], 4294967232  ;;  %s1216_s6 = sand.u32 1, %s997_s13   ;;  %p1390_p5 = scmp.ne.s32.totalorder %s1382_s25, 0 }
  0x74   : > { %s729_s29 = sshll.u32 %s1216_s6, 4  ;;  %s209_s9 = scalar_lea.sflag [#allocation10], %s1216_s6 }
  0x75   : > { %s212_s8 = scalar_lea.vmem [#allocation9], %s729_s29 }
  0x76   : > { %984 = dma.done.wait (%p1390_p5), %s209_s9, 256  }
  0x77   : > { %986 = vsyncadd (%p1390_p5), %s209_s9, 4294967040 }
  0x78   : > { %217 = sfence }
  0x79   : > { %v244_v0 = vlaneseq  ;;  %v851_v1 = vld [vmem:[%s212_s8] ss:$8 sps:$4 sm:$0xff]   ;;  %v853_v2 = vld [vmem:[%s212_s8 + $0x4] ss:$8 sps:$4 sm:$0xff]   ;;  %s1020_s23 = smov 2   ;;  %v1021_v6 = vmov 0.0  }
  0x7a   : > { %v415_v3 = vld [vmem:[#allocation8 + $0x1] ss:$2 sm:$0x3]  ;;  %v1226_v5 = vld [vmem:[#allocation8] ss:$2 sm:$0x3] }
  0x7b   : > { %v245_v4 = vshrl.u32 %v244_v0, 7  ;;  %452 = vrot.lane.b32.xlu1 %v415_v3, %s1020_s23  ;;  %vm297_vm0 = vcmp.lt.s32.totalorder %v244_v0, 290  ;;  %s1022_s25 = smov 16   ;;  %v1023_v17 = vmov 1966171168   ;;  %s1024_s22 = smov 32  }
  0x7c   : > { %299 = vst.msk [vmem:[#allocation2] sm:$0x7] %vm297_vm0, %v1021_v6  ;;  %300 = vst.msk [vmem:[#allocation3] sm:$0x7] %vm297_vm0, %v1021_v6  ;;  %v305_v18 = vunpack.c.l.s4 %v1023_v17  ;;  %s1025_s18 = smov 17   ;;  %s1026_s19 = smov 18  }
  0x7d   : > { %vm252_vm1 = vcmp.lt.s32.totalorder %v245_v4, 4  ;;  %s1027_s21 = smov 34   ;;  %vm1231_vm2 = vcmp.ge.s32.totalorder %v244_v0, 17  ;;  %vm1236_vm3 = vcmp.lt.s32.totalorder %v244_v0, 273  ;;  %vm321_vm4 = vcmask 138240   ;;  %s1245_s24 = sld [smem:[#allocation4 + $0x2]] }
  0x7e   : > { %v261_v7 = vsel %vm252_vm1, %v851_v1, 0.0  ;;  %v262_v8 = vsel %vm252_vm1, %v853_v2, 0.0  ;;  %v263_v9 = vsel %vm252_vm1, %v851_v1, -inf  ;;  %v264_v12 = vsel %vm252_vm1, %v853_v2, -inf  ;;  %vm326_vm5 = vmand %vm1231_vm2, %vm1236_vm3  ;;  %s1252_s30 = sld [smem:[#allocation4 + $0x3]]  ;;  %s1254_s7 = sld [smem:[#allocation4 + $0x5]] }
  0x7f   : > { %v267_v10 = vrot.slane %v261_v7, 4  ;;  %v273_v11 = vrot.slane %v262_v8, 4  ;;  %v279_v13 = vrot.slane %v263_v9, 4  ;;  %v285_v14 = vrot.slane %v264_v12, 4  ;;  %475 = vrot.lane.b32.xlu1 %v1226_v5, %s1022_s25  ;;  %s1256_s5 = sld [smem:[#allocation4 + $0xb]]  ;;  %s1258_s4 = sld [smem:[#allocation4 + $0xc]] }
  0x80   : > { %v306_v27 = vunpack.c.0.s8 %v305_v18  ;;  %s1260_s10 = sld [smem:[#allocation4 + $0x1]]  ;;  %s1262_s11 = sld [smem:[#allocation4 + $0xa]]  ;;  %vm455_vm6 = vcmask 15360   ;;  %vm478_vm7 = vcmask 130048   ;;  %vm515_vm8 = vcmask 146432  }
  0x81   : > { %v268_v15 = vadd.f32 %v267_v10, %v261_v7  ;;  %v274_v16 = vadd.f32 %v273_v11, %v262_v8  ;;  %v280_v19 = vmax.f32 %v263_v9, %v279_v13  ;;  %v286_v20 = vmax.f32 %v264_v12, %v285_v14  ;;  %s1265_s29 = sld [smem:[#allocation4 + $0xe]]  ;;  %s1267_s9 = sld [smem:[#allocation4 + $0xf]] }
  0x82   : > { %v309_v36 = vsub.s32 %v306_v27, %v245_v4  ;;  %s1274_s8 = sld [smem:[#allocation4 + $0xd]]  ;;  %s1276_s23 = sld [smem:[#allocation4 + $0x6]]  ;;  %vm537_vm9 = vcmask 261120   ;;  %vm574_vm10 = vcmask 277504   ;;  %vm440_vm11 = vcmask 1039360  }
  0x83   : > { %v269_v21 = vrot.slane %v268_v15, 2  ;;  %v275_v22 = vrot.slane %v274_v16, 2  ;;  %v281_v23 = vrot.slane %v280_v19, 2  ;;  %v287_v24 = vrot.slane %v286_v20, 2  ;;  %534 = vrot.lane.b32.xlu1 %v1226_v5, %s1024_s22  ;;  %s1278_s25 = sld [smem:[#allocation4 + $0x4]]  ;;  %s1285_s22 = sld [smem:[#allocation4 + $0x11]] }
  0x84   : > { %v445_v55 = vstv %s1245_s24  ;;  %v468_v60 = vstv %s1252_s30  ;;  %v506_v2 = vstv %s1254_s7  ;;  %s1028_s24 = smov 127   ;;  %s1029_s30 = smov 126   ;;  %vm463_vm12 = vcmask 1031168  }
  0x85   : > { %v270_v25 = vadd.f32 %v269_v21, %v268_v15  ;;  %v276_v26 = vadd.f32 %v275_v22, %v274_v16  ;;  %v282_v28 = vmax.f32 %v280_v19, %v281_v23  ;;  %v288_v29 = vmax.f32 %v286_v20, %v287_v24  ;;  %s1030_s7 = smov 112   ;;  %p1395_p9 = scmp.ne.s32.totalorder %s1383_s26, 0 }
  0x86   : > { %v448_v56 = vstv %s1256_s5  ;;  %v471_v58 = vstv %s1258_s4  ;;  %v429_v61 = vstv %s1260_s10  ;;  %v433_v62 = vstv %s1262_s11  ;;  %s1031_s5 = smov 111   ;;  %s1032_s4 = smov 110  }
  0x87   : > { %v271_v30 = vrot.slane %v270_v25, 1  ;;  %v277_v31 = vrot.slane %v276_v26, 1  ;;  %v283_v32 = vrot.slane %v282_v28, 1  ;;  %v289_v33 = vrot.slane %v288_v29, 1  ;;  %s1033_s10 = smov 96   ;;  %s1034_s11 = smov 95  }
  0x88   : > { %v531_v4 = vstv %s1267_s9  ;;  %v494_v13 = vstv %s1274_s8  ;;  %v528_v16 = vstv %s1276_s23  ;;  %s731_s9 = sld [smem:[#allocation4 + $0x9]]  ;;  %s416_s8 = sld [smem:[#allocation4]]  ;;  %vm486_vm13 = vcmask 916480  }
  0x89   : > { %v272_v34 = vadd.f32 %v271_v30, %v270_v25  ;;  %v278_v35 = vadd.f32 %v277_v31, %v276_v26  ;;  %v284_v37 = vmax.f32 %v282_v28, %v283_v32  ;;  %v290_v38 = vmax.f32 %v288_v29, %v289_v33  ;;  %s730_s23 = sshll.u32 %s1216_s6, 1 }
  0x8a   : > { %v491_v18 = vstv %s1278_s25  ;;  %v568_v29 = vstv %s1285_s22  ;;  %vm501_vm14 = vcmask 908288   ;;  %vm523_vm15 = vcmask 900096   ;;  %s755_s25 = sshll.u32 %s1005_s15, 5  ;;  %s235_s22 = scalar_lea.vmem [#allocation11], %s730_s23 }
  0x8b   : > { %v303_v39 = vcombine.low %v272_v34, %v278_v35  ;;  %v330_v40 = vcombine.low %v284_v37, %v290_v38  ;;  %vm545_vm0 = vcmask 785408   ;;  %vm560_vm1 = vcmask 777216   ;;  %s1036_s15 = smov [#allocation11]  }
  0x8c   : > { %vm582_vm2 = vcmask 769024   ;;  %vm594_vm3 = vcmp.lt.s32.totalorder %v244_v0, 256 }
  0x8d   : > { %v310_v41 = vrot.slane %v303_v39, %v309_v36  ;;  %v337_v42 = vrot.slane %v330_v40, %v309_v36 }
  0x8f   : > { %v317_v43 = vrot.slane %v310_v41, %v309_v36  ;;  %v344_v44 = vrot.slane %v337_v42, %v309_v36 }
  0x91   : > { %318 = vrot.lane.b32.xlu0 %v317_v43, %s1025_s18 }
  0x95   : > { %345 = vrot.lane.b32.xlu0 %v344_v44, %s1025_s18  ;;  %s1288_s18 = sld [smem:[#allocation4 + $0x8]] }
  0x99   : > { %512 = vrot.lane.b32.xlu0 %v415_v3, %s1026_s19  ;;  %s1295_s19 = sld [smem:[#allocation4 + $0x10]] }
  0x9b   : > { %v565_v35 = vstv %s1288_s18  ;;  %s612_s18 = sshll.u32 %s235_s22, 4  ;;  %s1324_s18 = int_to_ptr.vmem [resolvable:$true] %s612_s18 }
  0x9d   : > { %571 = vrot.lane.b32.xlu0 %v415_v3, %s1027_s21  ;;  %v509_v3 = vstv %s1265_s29  ;;  %s1304_s21 = sld [smem:[#allocation4 + $0x7]]  ;;  %s1035_s29 = smov 94  }
  0x9f   : > { %v553_v36 = vstv %s1295_s19 }
  0xa3   : > { %v550_v44 = vstv %s1304_s21 }
  0xed   : > { %v453_v52 = vpop.permute.xlu1 %452 }
  0xee   : > { %v454_v59 = vrot.slane %v453_v52, 7 }
  0xf0   : > { %v456_v15 = vsel %vm455_vm6, %v454_v59, %v453_v52 }
  0xf1   : > { %v476_v54 = vpop.permute.xlu1 %475 }
  0xf2   : > { %v477_v1 = vrot.slane %v476_v54, 7 }
  0xf4   : > { %v479_v20 = vsel %vm478_vm7, %v477_v1, %v476_v54 }
  0xf5   : > { %v535_v17 = vpop.permute.xlu1 %534 }
  0xf6   : > { %v536_v28 = vrot.slane %v535_v17, 7 }
  0xf8   : > { %v538_v41 = vsel %vm537_vm9, %v536_v28, %v535_v17 }
 0x103   : > { %v319_v47 = vpop.permute.xlu0 %318 }
 0x104   : > { %v320_v48 = vrot.slane %v319_v47, 7 }
 0x106   : > { %v322_v49 = vsel %vm321_vm4, %v320_v48, %v319_v47 }
 0x107   : > { %327 = vst.msk [vmem:[#allocation2] sm:$0x7] %vm326_vm5, %v322_v49  ;;  %v346_v50 = vpop.permute.xlu0 %345 }
 0x108   : > { %v347_v51 = vrot.slane %v346_v50, 7 }
 0x10a   : > { %v348_v53 = vsel %vm321_vm4, %v347_v51, %v346_v50 }
 0x10b   : > { %350 = vst.msk [vmem:[#allocation3] sm:$0x7] %vm326_vm5, %v348_v53  ;;  %v513_v9 = vpop.permute.xlu0 %512  ;;  %v422_v53 = vstv %s731_s9 }
 0x10c   : > { %v514_v24 = vrot.slane %v513_v9, 7 }
 0x10e   : > { %v1282_v57 = vld [vmem:[#allocation2] sm:$0x7]  ;;  %v516_v37 = vsel %vm515_vm8, %v514_v24, %v513_v9 }
 0x10f   : > { %v446_v6 = vmul.f32 %v445_v55, %v1282_v57  ;;  %v469_v10 = vmul.f32 %v468_v60, %v1282_v57  ;;  %v430_v11 = vmul.f32 %v429_v61, %v1282_v57  ;;  %v507_v27 = vmul.f32 %v506_v2, %v1282_v57  ;;  %v572_v31 = vpop.permute.xlu0 %571  ;;  %v417_v55 = vld [vmem:[#allocation2] sm:$0x3] }
 0x110   : > { %v529_v30 = vmul.f32 %v528_v16, %v1282_v57  ;;  %v492_v32 = vmul.f32 %v491_v18, %v1282_v57  ;;  %v573_v42 = vrot.slane %v572_v31, 7  ;;  %v566_v43 = vmul.f32 %v565_v35, %v1282_v57 }
 0x111   : > { %v551_v50 = vmul.f32 %v550_v44, %v1282_v57 }
 0x112   : > { %v432_v63 = vld [vmem:[#allocation3] sm:$0x7]  ;;  %v575_v49 = vsel %vm574_vm10, %v573_v42, %v572_v31 }
 0x113   : > { %v449_v7 = vmul.f32 %v448_v56, %v432_v63  ;;  %v472_v8 = vmul.f32 %v471_v58, %v432_v63  ;;  %v434_v12 = vmul.f32 %v433_v62, %v432_v63  ;;  %v510_v21 = vmul.f32 %v509_v3, %v432_v63  ;;  %v421_v54 = vld [vmem:[#allocation3] sm:$0x3] }
 0x114   : > { %v532_v25 = vmul.f32 %v531_v4, %v432_v63  ;;  %v495_v26 = vmul.f32 %v494_v13, %v432_v63  ;;  %v569_v39 = vmul.f32 %v568_v29, %v432_v63  ;;  %v554_v46 = vmul.f32 %v553_v36, %v432_v63 }
 0x115   : > { %v450_v14 = vadd.f32 %v449_v7, %v446_v6  ;;  %v473_v19 = vadd.f32 %v472_v8, %v469_v10  ;;  %v435_v22 = vadd.f32 %v434_v12, %v430_v11  ;;  %v511_v34 = vadd.f32 %v510_v21, %v507_v27 }
 0x116   : > { %v533_v38 = vadd.f32 %v532_v25, %v529_v30  ;;  %v496_v40 = vadd.f32 %v495_v26, %v492_v32  ;;  %v570_v48 = vadd.f32 %v569_v39, %v566_v43  ;;  %v555_v51 = vadd.f32 %v554_v46, %v551_v50 }
 0x117   : > { %v458_v23 = vmul.f32 %v456_v15, %v450_v14  ;;  %437 = vrot.lane.b32.xlu1 %v435_v22, %s1028_s24  ;;  %v481_v33 = vmul.f32 %v479_v20, %v473_v19  ;;  %v518_v45 = vmul.f32 %v516_v37, %v511_v34  ;;  %v418_v56 = vstv %s416_s8  ;;  %s1322_s24 = scalar_lea.hbm %s1374_s3, %s755_s25 }
 0x118   : > { %v540_v47 = vmul.f32 %v538_v41, %v533_v38  ;;  %v577_v52 = vmul.f32 %v575_v49, %v570_v48  ;;  %v423_v58 = vmul.f32 %v422_v53, %v421_v54  ;;  %v419_v59 = vmul.f32 %v418_v56, %v417_v55 }
 0x119   : > { %460 = vrot.lane.b32.xlu0 %v458_v23, %s1029_s30  ;;  %s598_s30 = scalar_lea.sflag [#allocation6], %s1216_s6 }
 0x11a   : > { %v424_v60 = vadd.f32 %v423_v58, %v419_v59 }
 0x11b   : > { %483 = vrot.lane.b32.xlu1 %v481_v33, %s1030_s7  ;;  %s923_s7 = scalar_lea.vmem %s1324_s18, 32 }
 0x11c   : > { %v425_v63 = vmul.f32 %v424_v60, %v1226_v5  ;;  %p924_p8 = scmp.ne.s32.totalorder %s1324_s18, %s923_s7 }
 0x11d   : > { %498 = vrot.lane.b32.xlu0 %v496_v40, %s1031_s5  ;;  %s927_s5 = sshll.u32 %s1036_s15, 4  ;;  %s928_s5 = int_to_ptr.vmem [resolvable:$false] %s927_s5 }
 0x11e   : > { %p925_p11 = pnand %p924_p8, %p1395_p9  ;;  %p930_p1 = scmp.lt.s32.totalorder %s1324_s18, %s928_s5 }
 0x11f   : > { %520 = vrot.lane.b32.xlu1 %v518_v45, %s1032_s4  ;;  %s929_s4 = scalar_lea.vmem %s928_s5, 64 }
 0x120   : > { %p926_p0 = pneg %p925_p11  ;;  %p931_p6 = scmp.lt.s32.totalorder %s929_s4, %s923_s7 }
 0x121   : > { %542 = vrot.lane.b32.xlu0 %v540_v47, %s1033_s10 }
 0x122   : > { %p932_p7 = por %p931_p6, %p930_p1 }
 0x123   : > { %557 = vrot.lane.b32.xlu1 %v555_v51, %s1034_s11 }
 0x124   : > { %p933_p10 = pnand %p932_p7, %p926_p0 }
 0x125   : > { %579 = vrot.lane.b32.xlu0 %v577_v52, %s1035_s29 }
 0x189   : > { %v438_v61 = vpop.permute.xlu1 %437 }
 0x18a   : > { %v439_v57 = vrot.slane %v438_v61, 1 }
 0x18b   : > { %v461_v62 = vpop.permute.xlu0 %460 }
 0x18c   : > { %v462_v1 = vrot.slane %v461_v62, 1  ;;  %v441_v2 = vsel %vm440_vm11, %v438_v61, %v439_v57 }
 0x18d   : > { %v443_v3 = vadd.f32 %v441_v2, %v425_v63  ;;  %v484_v6 = vpop.permute.xlu1 %483 }
 0x18e   : > { %v464_v4 = vsel %vm463_vm12, %v461_v62, %v462_v1  ;;  %v485_v7 = vrot.slane %v484_v6, 1 }
 0x18f   : > { %v499_v8 = vpop.permute.xlu0 %498  ;;  %v466_v9 = vadd.f32 %v464_v4, %v443_v3 }
 0x190   : > { %v500_v10 = vrot.slane %v499_v8, 1  ;;  %v487_v11 = vsel %vm486_vm13, %v484_v6, %v485_v7 }
 0x191   : > { %v489_v12 = vadd.f32 %v487_v11, %v466_v9  ;;  %v521_v14 = vpop.permute.xlu1 %520 }
 0x192   : > { %v502_v13 = vsel %vm501_vm14, %v499_v8, %v500_v10  ;;  %v522_v15 = vrot.slane %v521_v14, 1 }
 0x193   : > { %v543_v16 = vpop.permute.xlu0 %542  ;;  %v504_v5 = vadd.f32 %v502_v13, %v489_v12 }
 0x194   : > { %v544_v17 = vrot.slane %v543_v16, 1  ;;  %v524_v18 = vsel %vm523_vm15, %v521_v14, %v522_v15 }
 0x195   : > { %v526_v19 = vadd.f32 %v524_v18, %v504_v5  ;;  %v558_v21 = vpop.permute.xlu1 %557 }
 0x196   : > { %v546_v20 = vsel %vm545_vm0, %v543_v16, %v544_v17  ;;  %v559_v22 = vrot.slane %v558_v21, 1 }
 0x197   : > { %v580_v23 = vpop.permute.xlu0 %579  ;;  %v548_v24 = vadd.f32 %v546_v20, %v526_v19 }
 0x198   : > { %v581_v25 = vrot.slane %v580_v23, 1  ;;  %v561_v26 = vsel %vm560_vm1, %v558_v21, %v559_v22 }
 0x199   : > { %v563_v27 = vadd.f32 %v561_v26, %v548_v24 }
 0x19a   : > { %v583_v28 = vsel %vm582_vm2, %v580_v23, %v581_v25 }
 0x19b   : > { %v585_v29 = vadd.f32 %v583_v28, %v563_v27 }
 0x19d   : > { %v748_v30 = vmul.f32 -1.442695, %v585_v29 }
 0x19f   : > { %854 = vpow2.f32 %v748_v30 }
 0x1a9   : > { %v855_v31 = vpop.eup %854 }
 0x1aa   : > { %v589_v32 = vadd.f32 1.0, %v855_v31 }
 0x1ac   : > { %856 = vrcp.f32 %v589_v32 }
 0x1b6   : > { %v857_v33 = vpop.eup %856 }
 0x1b7   : > { %596 = vst.msk [vmem:[%s235_s22] sm:$0x3] %vm594_vm3, %v857_v33 }
 0x1b8   : > { %936 = shalt.err (!%p933_p10)
}
 0x1b9   : > { %s937_s6 = scalar_lea.hbm %s1322_s24, 32  ;;  %s941_s29 = scalar_lea.hbm %s1374_s3, 64 }
 0x1ba   : > { %p938_p12 = scmp.ne.s32.totalorder %s1322_s24, %s937_s6  ;;  %p942_p4 = scmp.lt.u32.totalorder %s1322_s24, %s1374_s3 }
 0x1bb   : > { %p943_p5 = scmp.lt.u32.totalorder %s941_s29, %s937_s6  ;;  %p945_p11 = scmp.lt.u32.totalorder %s937_s6, %s1322_s24 }
 0x1bc   : > { %p939_p13 = pnand %p938_p12, %p1395_p9 }
 0x1bd   : > { %p944_p8 = por %p943_p5, %p942_p4 }
 0x1be   : > { %p940_p3 = pneg %p939_p13 }
 0x1bf   : > { %p946_p0 = por %p945_p11, %p944_p8 }
 0x1c1   : > { %p947_p1 = pnand %p946_p0, %p940_p3 }
 0x1c3   : > { %950 = shalt.err (!%p947_p1)
}
 0x1c4   : > { %765 = dma.vmem_to_hbm [thread:$0]  (%p1395_p9), %s1324_s18, 32, %s1322_s24, %s598_s30  }
 0x1c5 PF: > { %s624_s23 = sand.u32 1, %s993_s12   ;;  %p1396_p6 = scmp.ne.s32.totalorder %s1384_s28, 0 }
 0x1c6   : > { %s625_s25 = scalar_lea.sflag [#allocation6], %s624_s23 }
 0x1c7   : > { %p775_p7 = pnand %p722_p2, %p1396_p6 }
 0x1c9   : > { %988 = dma.done.wait (!%p775_p7), %s625_s25, 32  }
 0x1ca   : > { %990 = vsyncadd (!%p775_p7), %s625_s25, 4294967264  ;;  %s21_s17 = sadd.s32 1, %s1013_s17   ;;  %s1397_s12 = smov %s997_s13 }
 0x1cb   : > { %p18_p10 = scmp.ge.s32.totalorder %s21_s17, 4   ;;  %s1398_s13 = smov %s1001_s14 }
 0x1cc   : > { %s1399_s14 = smov %s1119_s27  ;;  %s1400_s15 = smov %s1009_s16 }
 0x1cd   : > { %s1401_s16 = smov %s1403_s20  ;;  %20 = sbr.rel (!%p18_p10) target bundleno = 8 (0x8), region = 101 }
 0x1d4   :  { %630 = vsyncpa [#allocation5], 1 }
 0x1d5   :  { %632 = vsyncpa [#allocation5 + $0x1], 1 }
 0x1d6   :  { %633 = vsyncpa [#allocation10], 1 }
 0x1d7   :  { %635 = vsyncpa [#allocation10 + $0x1], 1 }
 0x1d8   :  { %636 = vsyncpa [#allocation6], 1 }
 0x1d9   :  { %638 = vsyncpa [#allocation6 + $0x1], 1 }
 0x1da   :  { %639 = vsyncpa [#allocation7], 1 }
 0x1db   :  { %641 = vsyncpa [#allocation7 + $0x1], 1 }

</bundles_post_ra>
